<compile_context>
chip_gen: v7x
topology: tpu7x:2x2x1
jax: 0.10.0
libtpu: 0.0.40
codegen_flags: <defaults>
</compile_context>

<pallas_src>
import jax
import jax.numpy as jnp
from jax.experimental import pallas as pl
from jax.experimental.pallas import tpu as pltpu

HIDDEN = 256
LANE = 128


def _round_up(n: int, m: int) -> int:
    return ((n + m - 1) // m) * m


def ppo_critic_kernel(x_ref, w1_ref, w2_ref, slab_ref, out_ref):
    """One batch tile.

    x_ref   : (D_PAD, TILE_B)   input features^T (batch on the lane axis)
    w1_ref  : (HIDDEN, D_PAD)   torch-layout W1 (zero-padded on the K axis)
    w2_ref  : (HIDDEN, HIDDEN)  torch-layout W2
    slab_ref: (HIDDEN, 4)       columns = [b1, b2, w3, b3(broadcast)]
    out_ref : (1, TILE_B)       lane-dense value row
    """
    x = x_ref[...]                       # (D_PAD, TILE_B) f32

    b1 = slab_ref[:, 0:1]                # (HIDDEN, 1)
    b2 = slab_ref[:, 1:2]                # (HIDDEN, 1)
    w3 = slab_ref[:, 2:3]                # (HIDDEN, 1)
    b3 = slab_ref[0:1, 3:4]              # (1, 1)

    # Layer 1: Linear -> ReLU   (y_col = W1 @ x_col + b1)
    h = jnp.dot(w1_ref[...], x, preferred_element_type=jnp.float32) + b1
    h = jnp.maximum(h, 0.0)

    # Layer 2: Linear -> ReLU
    h = jnp.dot(w2_ref[...], h, preferred_element_type=jnp.float32) + b2
    h = jnp.maximum(h, 0.0)

    # Head 256 -> 1: VPU multiply + sublane reduction (avoids an M=1 matmul),
    # result is already lane-dense (1, TILE_B).
    v = jnp.sum(h * w3, axis=0, keepdims=True) + b3
    out_ref[...] = v.astype(out_ref.dtype)


def ppo_d_critic_forward(x, params, *, tile_b=None):
    """x: (B, input_dim) float32 -> (B, 1) float32."""
    x = jnp.asarray(x, jnp.float32)
    B, d_in = x.shape
    d_pad = _round_up(d_in, LANE)

    if tile_b is None:
        tile_b = min(512, _round_up(max(B, 1), LANE))
    else:
        tile_b = _round_up(tile_b, LANE)
    b_pad = _round_up(B, tile_b)
    num_tiles = b_pad // tile_b

    # Feature-padded, batch-padded, transposed input: (d_pad, b_pad).
    x_t = jnp.zeros((d_pad, b_pad), jnp.float32).at[:d_in, :B].set(x.T)

    # W1 zero-padded on the input-feature axis (keeps x padding exact).
    w1 = jnp.zeros((HIDDEN, d_pad), jnp.float32).at[:, :d_in].set(
        params["w1"].astype(jnp.float32))
    w2 = params["w2"].astype(jnp.float32)

    # Consolidated small-parameter slab: columns [b1, b2, w3, b3].
    slab = jnp.stack(
        [
            params["b1"].astype(jnp.float32),
            params["b2"].astype(jnp.float32),
            params["w3"].reshape(HIDDEN).astype(jnp.float32),
            jnp.broadcast_to(params["b3"].reshape(()).astype(jnp.float32),
                             (HIDDEN,)),
        ],
        axis=1,
    )  # (HIDDEN, 4)

    out_row = pl.pallas_call(
        ppo_critic_kernel,
        out_shape=jax.ShapeDtypeStruct((1, b_pad), jnp.float32),
        grid=(num_tiles,),
        in_specs=[
            pl.BlockSpec((d_pad, tile_b), lambda i: (0, i)),     # x tiles stream
            pl.BlockSpec((HIDDEN, d_pad), lambda i: (0, 0)),     # resident
            pl.BlockSpec((HIDDEN, HIDDEN), lambda i: (0, 0)),    # resident
            pl.BlockSpec((HIDDEN, 4), lambda i: (0, 0)),         # resident
        ],
        out_specs=pl.BlockSpec((1, tile_b), lambda i: (0, i)),   # lane-dense
        compiler_params=pltpu.CompilerParams(
            dimension_semantics=("parallel",),
        ),
    )(x_t, w1, w2, slab)

    return out_row[0, :B].reshape(B, 1)


def init_params(key, input_dim):
    """Torch-default Linear init, torch-native (out_features, in_features) layout."""
    ks = jax.random.split(key, 6)

    def lin(kw, kb, fan_in, fan_out):
        bound = 1.0 / (fan_in ** 0.5)
        w = jax.random.uniform(kw, (fan_out, fan_in), jnp.float32, -bound, bound)
        b = jax.random.uniform(kb, (fan_out,), jnp.float32, -bound, bound)
        return w, b

    w1, b1 = lin(ks[0], ks[1], input_dim, HIDDEN)
    w2, b2 = lin(ks[2], ks[3], HIDDEN, HIDDEN)
    w3, b3 = lin(ks[4], ks[5], HIDDEN, 1)
    return {"w1": w1, "b1": b1, "w2": w2, "b2": b2, "w3": w3, "b3": b3}


def _reference_forward(x, p):
    hp = jax.lax.Precision.HIGHEST
    h = jnp.maximum(jnp.dot(x, p["w1"].T, precision=hp) + p["b1"], 0.0)
    h = jnp.maximum(jnp.dot(h, p["w2"].T, precision=hp) + p["b2"], 0.0)
    return jnp.dot(h, p["w3"].T, precision=hp) + p["b3"]


if __name__ == "__main__":
    input_dim = 20
    batch = 8

    key = jax.random.PRNGKey(0)
    k_params, k_x, k_x2 = jax.random.split(key, 3)
    params = init_params(k_params, input_dim)

    # Small-shape check (single grid step).
    x = jax.random.normal(k_x, (batch, input_dim), jnp.float32)
    fwd = jax.jit(lambda xx: ppo_d_critic_forward(xx, params))
    v = jax.block_until_ready(fwd(x))
    ref = _reference_forward(x, params)
    assert v.shape == (batch, 1), v.shape
    assert jnp.allclose(v, ref, atol=1e-4, rtol=1e-3), (v, ref)

    # Multi-tile check (exercises the batch grid, remainder padding, resident weights).
    x_big = jax.random.normal(k_x2, (1100, input_dim), jnp.float32)
    v_big = jax.block_until_ready(ppo_d_critic_forward(x_big, params))
    ref_big = _reference_forward(x_big, params)
    assert v_big.shape == (1100, 1), v_big.shape
    assert jnp.allclose(v_big, ref_big, atol=1e-4, rtol=1e-3)

    print("KERNEL_OK")
</pallas_src>

<mosaic_0001>
module attributes {stable_mosaic.version = 11 : i64} {
  func.func @ppo_critic_kernel(%arg0: i32, %arg1: memref<128x128xf32, #tpu.memory_space<vmem>>, %arg2: memref<256x128xf32, #tpu.memory_space<vmem>>, %arg3: memref<256x256xf32, #tpu.memory_space<vmem>>, %arg4: memref<256x4xf32, #tpu.memory_space<vmem>>, %arg5: memref<1x128xf32, #tpu.memory_space<vmem>>) attributes {dimension_semantics = [#tpu.dimension_semantics<parallel>], iteration_bounds = array<i64: 1>, scalar_prefetch = 0 : i64, scratch_operands = 0 : i64, tpu.core_type = #tpu.core_type<tc>, window_params = [{transform_indices = @transform_0, window_bounds = array<i64: 128, 128>}, {pipeline_mode = #tpu.pipeline_mode<synchronous>, transform_indices = @transform_1, window_bounds = array<i64: 256, 128>}, {pipeline_mode = #tpu.pipeline_mode<synchronous>, transform_indices = @transform_2, window_bounds = array<i64: 256, 256>}, {pipeline_mode = #tpu.pipeline_mode<synchronous>, transform_indices = @transform_3, window_bounds = array<i64: 256, 4>}, {transform_indices = @transform_4, window_bounds = array<i64: 1, 128>}]} {
    %c0 = arith.constant 0 : index
    %c0_0 = arith.constant 0 : index
    %0 = vector.load %arg1[%c0, %c0_0] : memref<128x128xf32, #tpu.memory_space<vmem>>, vector<128x128xf32>
    %c0_1 = arith.constant 0 : index
    %c0_2 = arith.constant 0 : index
    %1 = vector.load %arg4[%c0_1, %c0_2] : memref<256x4xf32, #tpu.memory_space<vmem>>, vector<256x1xf32>
    %c0_3 = arith.constant 0 : index
    %c1 = arith.constant 1 : index
    %2 = vector.load %arg4[%c0_3, %c1] : memref<256x4xf32, #tpu.memory_space<vmem>>, vector<256x1xf32>
    %c0_4 = arith.constant 0 : index
    %c2 = arith.constant 2 : index
    %3 = vector.load %arg4[%c0_4, %c2] : memref<256x4xf32, #tpu.memory_space<vmem>>, vector<256x1xf32>
    %c0_5 = arith.constant 0 : index
    %c3 = arith.constant 3 : index
    %4 = vector.load %arg4[%c0_5, %c3] : memref<256x4xf32, #tpu.memory_space<vmem>>, vector<1x1xf32>
    %c0_6 = arith.constant 0 : index
    %c0_7 = arith.constant 0 : index
    %5 = vector.load %arg2[%c0_6, %c0_7] : memref<256x128xf32, #tpu.memory_space<vmem>>, vector<256x128xf32>
    %cst = arith.constant dense<0.000000e+00> : vector<256x128xf32>
    %6 = tpu.matmul %5, %0, %cst {dimension_numbers = #tpu.dot_dimension_numbers<[1], [0], [0], [1], [0, 0, 1, 1], [], []>} : vector<256x128xf32>, vector<128x128xf32>, vector<256x128xf32> -> vector<256x128xf32>
    %7 = vector.broadcast %1 : vector<256x1xf32> to vector<256x128xf32>
    %8 = arith.addf %6, %7 : vector<256x128xf32>
    %cst_8 = arith.constant 0.000000e+00 : f32
    %9 = vector.broadcast %cst_8 : f32 to vector<256x128xf32>
    %10 = arith.maximumf %8, %9 : vector<256x128xf32>
    %c0_9 = arith.constant 0 : index
    %c0_10 = arith.constant 0 : index
    %11 = vector.load %arg3[%c0_9, %c0_10] : memref<256x256xf32, #tpu.memory_space<vmem>>, vector<256x256xf32>
    %cst_11 = arith.constant dense<0.000000e+00> : vector<256x128xf32>
    %12 = tpu.matmul %11, %10, %cst_11 {dimension_numbers = #tpu.dot_dimension_numbers<[1], [0], [0], [1], [0, 0, 1, 1], [], []>} : vector<256x256xf32>, vector<256x128xf32>, vector<256x128xf32> -> vector<256x128xf32>
    %13 = vector.broadcast %2 : vector<256x1xf32> to vector<256x128xf32>
    %14 = arith.addf %12, %13 : vector<256x128xf32>
    %cst_12 = arith.constant 0.000000e+00 : f32
    %15 = vector.broadcast %cst_12 : f32 to vector<256x128xf32>
    %16 = arith.maximumf %14, %15 : vector<256x128xf32>
    %17 = vector.broadcast %3 : vector<256x1xf32> to vector<256x128xf32>
    %18 = arith.mulf %16, %17 : vector<256x128xf32>
    %cst_13 = arith.constant dense<0.000000e+00> : vector<128xf32>
    %19 = vector.multi_reduction <add>, %18, %cst_13 [0] : vector<256x128xf32> to vector<128xf32>
    %20 = vector.shape_cast %19 : vector<128xf32> to vector<1x128xf32>
    %21 = vector.broadcast %4 : vector<1x1xf32> to vector<1x128xf32>
    %22 = arith.addf %20, %21 : vector<1x128xf32>
    %c0_14 = arith.constant 0 : index
    %c0_15 = arith.constant 0 : index
    %23 = vector.load %arg5[%c0_14, %c0_15] : memref<1x128xf32, #tpu.memory_space<vmem>>, vector<1x128xf32>
    tpu.vector_store %arg5[%c0_14, %c0_15], %22 {strides = array<i32>} : memref<1x128xf32, #tpu.memory_space<vmem>>, vector<1x128xf32>,
    return
  }
  func.func @transform_0(%arg0: i32) -> (i32, i32) {
    %c0_i32 = arith.constant 0 : i32
    %c0_i32_0 = arith.constant 0 : i32
    return %c0_i32, %arg0 : i32, i32
  }
  func.func @transform_1(%arg0: i32) -> (i32, i32) {
    %c0_i32 = arith.constant 0 : i32
    %c0_i32_0 = arith.constant 0 : i32
    %c0_i32_1 = arith.constant 0 : i32
    return %c0_i32, %c0_i32_0 : i32, i32
  }
  func.func @transform_2(%arg0: i32) -> (i32, i32) {
    %c0_i32 = arith.constant 0 : i32
    %c0_i32_0 = arith.constant 0 : i32
    %c0_i32_1 = arith.constant 0 : i32
    return %c0_i32, %c0_i32_0 : i32, i32
  }
  func.func @transform_3(%arg0: i32) -> (i32, i32) {
    %c0_i32 = arith.constant 0 : i32
    %c0_i32_0 = arith.constant 0 : i32
    %c0_i32_1 = arith.constant 0 : i32
    return %c0_i32, %c0_i32_0 : i32, i32
  }
  func.func @transform_4(%arg0: i32) -> (i32, i32) {
    %c0_i32 = arith.constant 0 : i32
    %c0_i32_0 = arith.constant 0 : i32
    return %c0_i32, %arg0 : i32, i32
  }
}

</mosaic_0001>

<bundles_post_ra>
// kernel: _lambda_.1
= control target key start
LH: loop header
LB: loop body
LE: loop exit
PB: predicated region body
PF: predicated region fallthrough
CT: control target
= control target key end

     0   :  { %v1427_v3 = vmov 0   ;;  %s2244_s0 = inlined_call_operand.vmem [shape: f32[128,128], index: 0, kind: input, shape index: {}]   ;;  %s2245_s1 = inlined_call_operand.vmem [shape: f32[256,128], index: 1, kind: input, shape index: {}]   ;;  %s2246_s3 = inlined_call_operand.vmem [shape: f32[256,4], index: 3, kind: input, shape index: {}]   ;;  %s2247_s2 = inlined_call_operand.vmem [shape: f32[256,256], index: 2, kind: input, shape index: {}]   ;;  %s2248_s4 = inlined_call_operand.vmem [shape: f32[1,128], index: 4, kind: output, shape index: {}]  }
   0x1   :  { %v17_v0 = vld [vmem:[%s2244_s0] sm:$0xff]  ;;  %v18_v1 = vld [vmem:[%s2244_s0 + $0x8] sm:$0xff]  ;;  %v19_v2 = vld [vmem:[%s2244_s0 + $0x10] sm:$0xff]  ;;  %1417 = vset.pattern.permute.xlu0 %v1427_v3  ;;  %1418 = vset.pattern.permute.xlu1 %v1427_v3 }
   0x2   :  { %v1300_v4 = vpack.c.bf16 %v18_v1, %v17_v0  ;;  %v20_v5 = vld [vmem:[%s2244_s0 + $0x18] sm:$0xff]  ;;  %v21_v7 = vld [vmem:[%s2244_s0 + $0x20] sm:$0xff]  ;;  %v22_v8 = vld [vmem:[%s2244_s0 + $0x28] sm:$0xff] }
   0x3   :  { %v1304_v6 = vpack.c.bf16 %v20_v5, %v19_v2  ;;  %v1308_v9 = vpack.c.bf16 %v22_v8, %v21_v7  ;;  %v66_v10 = vld [vmem:[%s2245_s1] sm:$0xff]  ;;  %v23_v11 = vld [vmem:[%s2244_s0 + $0x30] sm:$0xff]  ;;  %v24_v12 = vld [vmem:[%s2244_s0 + $0x38] sm:$0xff] }
   0x4   :  { %1301 = vmatprep.subr.bf16.mxu0 %v1300_v4  ;;  %1252 = vmatprep.mubr.f32.mxu0 %v66_v10  ;;  %v1312_v13 = vpack.c.bf16 %v24_v12, %v23_v11  ;;  %v1487_v14 = vld [vmem:[%s2246_s3] sm:$0xff]  ;;  %v26_v16 = vld [vmem:[%s2244_s0 + $0x48] sm:$0xff]  ;;  %v1499_v17 = vld [vmem:[%s2246_s3 + $0x10] sm:$0xff] }
   0x5   :  { %1303 = vmatpush3.bf16.msra.mxu0 %v1300_v4  ;;  %v25_v15 = vld [vmem:[%s2244_s0 + $0x40] sm:$0xff]  ;;  %100 = vperm.xlu0 %1417, %v1487_v14   ;;  %v1505_v18 = vld [vmem:[%s2246_s3 + $0x8] sm:$0xff]  ;;  %v1510_v19 = vld [vmem:[%s2246_s3 + $0x18] sm:$0xff] }
   0x6   :  { %1305 = vmatprep.subr.bf16.mxu0 %v1304_v6  ;;  %110 = vperm.xlu1 %1418, %v1499_v17   ;;  %v1316_v20 = vpack.c.bf16 %v26_v16, %v25_v15  ;;  %v27_v21 = vld [vmem:[%s2244_s0 + $0x50] sm:$0xff]  ;;  %v28_v22 = vld [vmem:[%s2244_s0 + $0x58] sm:$0xff]  ;;  %v1523_v23 = vld [vmem:[%s2246_s3 + $0x20] sm:$0xff] }
   0x7   :  { %v1528_v24 = vld [vmem:[%s2246_s3 + $0x28] sm:$0xff]  ;;  %v1320_v25 = vpack.c.bf16 %v28_v22, %v27_v21  ;;  %v29_v26 = vld [vmem:[%s2244_s0 + $0x60] sm:$0xff]  ;;  %v1541_v28 = vld [vmem:[%s2246_s3 + $0x30] sm:$0xff] }
   0x8   :  { %v30_v27 = vld [vmem:[%s2244_s0 + $0x68] sm:$0xff]  ;;  %v1546_v29 = vld [vmem:[%s2246_s3 + $0x38] sm:$0xff]  ;;  %v31_v31 = vld [vmem:[%s2244_s0 + $0x70] sm:$0xff] }
   0x9   :  { %1307 = vmatpush3.bf16.msra.mxu0 %v1304_v6  ;;  %105 = vperm.xlu0 %1417, %v1505_v18   ;;  %v1324_v30 = vpack.c.bf16 %v30_v27, %v29_v26  ;;  %v32_v32 = vld [vmem:[%s2244_s0 + $0x78] sm:$0xff]  ;;  %v1559_v33 = vld [vmem:[%s2246_s3 + $0x40] sm:$0xff]  ;;  %v1564_v34 = vld [vmem:[%s2246_s3 + $0x48] sm:$0xff] }
   0xa   :  { %1309 = vmatprep.subr.bf16.mxu0 %v1308_v9  ;;  %115 = vperm.xlu1 %1418, %v1510_v19   ;;  %v1328_v35 = vpack.c.bf16 %v32_v32, %v31_v31  ;;  %v1571_v36 = vld [vmem:[%s2246_s3 + $0x50] sm:$0xff]  ;;  %v1576_v37 = vld [vmem:[%s2246_s3 + $0x58] sm:$0xff]  ;;  %v1583_v38 = vld [vmem:[%s2246_s3 + $0x60] sm:$0xff] }
   0xb   :  { %v67_v39 = vld [vmem:[%s2245_s1 + $0x8] sm:$0xff]  ;;  %v68_v41 = vld [vmem:[%s2245_s1 + $0x10] sm:$0xff]  ;;  %v69_v43 = vld [vmem:[%s2245_s1 + $0x18] sm:$0xff] }
   0xc   :  { %v1591_v40 = vld [vmem:[%s2246_s3 + $0x68] sm:$0xff]  ;;  %v1601_v42 = vld [vmem:[%s2246_s3 + $0x70] sm:$0xff]  ;;  %v1609_v44 = vld [vmem:[%s2246_s3 + $0x78] sm:$0xff] }
   0xd   :  { %1311 = vmatpush3.bf16.msra.mxu0 %v1308_v9  ;;  %120 = vperm.xlu0 %1417, %v1523_v23   ;;  %v70_v45 = vld [vmem:[%s2245_s1 + $0x20] sm:$0xff]  ;;  %v71_v47 = vld [vmem:[%s2245_s1 + $0x28] sm:$0xff]  ;;  %v72_v49 = vld [vmem:[%s2245_s1 + $0x30] sm:$0xff] }
   0xe   :  { %1313 = vmatprep.subr.bf16.mxu0 %v1312_v13  ;;  %125 = vperm.xlu1 %1418, %v1528_v24   ;;  %v1619_v46 = vld [vmem:[%s2246_s3 + $0x80] sm:$0xff]  ;;  %v1627_v48 = vld [vmem:[%s2246_s3 + $0x88] sm:$0xff]  ;;  %v1637_v50 = vld [vmem:[%s2246_s3 + $0x90] sm:$0xff] }
   0xf   :  { %v73_v51 = vld [vmem:[%s2245_s1 + $0x38] sm:$0xff]  ;;  %v74_v53 = vld [vmem:[%s2245_s1 + $0x40] sm:$0xff]  ;;  %v75_v55 = vld [vmem:[%s2245_s1 + $0x48] sm:$0xff] }
  0x10   :  { %v1645_v52 = vld [vmem:[%s2246_s3 + $0x98] sm:$0xff]  ;;  %v1655_v54 = vld [vmem:[%s2246_s3 + $0xa0] sm:$0xff]  ;;  %v1663_v56 = vld [vmem:[%s2246_s3 + $0xa8] sm:$0xff] }
  0x11   :  { %1315 = vmatpush3.bf16.msra.mxu0 %v1312_v13  ;;  %130 = vperm.xlu0 %1417, %v1541_v28   ;;  %v76_v57 = vld [vmem:[%s2245_s1 + $0x50] sm:$0xff]  ;;  %v77_v59 = vld [vmem:[%s2245_s1 + $0x58] sm:$0xff]  ;;  %v78_v61 = vld [vmem:[%s2245_s1 + $0x60] sm:$0xff] }
  0x12   :  { %1317 = vmatprep.subr.bf16.mxu0 %v1316_v20  ;;  %135 = vperm.xlu1 %1418, %v1546_v29   ;;  %v1673_v58 = vld [vmem:[%s2246_s3 + $0xb0] sm:$0xff]  ;;  %v1681_v60 = vld [vmem:[%s2246_s3 + $0xb8] sm:$0xff]  ;;  %v1691_v62 = vld [vmem:[%s2246_s3 + $0xc0] sm:$0xff] }
  0x13   :  { %v79_v63 = vld [vmem:[%s2245_s1 + $0x68] sm:$0xff]  ;;  %v80_v1 = vld [vmem:[%s2245_s1 + $0x70] sm:$0xff]  ;;  %v81_v3 = vld [vmem:[%s2245_s1 + $0x78] sm:$0xff] }
  0x14   :  { %v1699_v0 = vld [vmem:[%s2246_s3 + $0xc8] sm:$0xff]  ;;  %v1709_v2 = vld [vmem:[%s2246_s3 + $0xd0] sm:$0xff]  ;;  %v1717_v4 = vld [vmem:[%s2246_s3 + $0xd8] sm:$0xff] }
  0x15   :  { %1319 = vmatpush3.bf16.msra.mxu0 %v1316_v20  ;;  %140 = vperm.xlu0 %1417, %v1559_v33   ;;  %v82_v5 = vld [vmem:[%s2245_s1 + $0x80] sm:$0xff]  ;;  %v83_v7 = vld [vmem:[%s2245_s1 + $0x88] sm:$0xff]  ;;  %v84_v9 = vld [vmem:[%s2245_s1 + $0x90] sm:$0xff] }
  0x16   :  { %1321 = vmatprep.subr.bf16.mxu0 %v1320_v25  ;;  %145 = vperm.xlu1 %1418, %v1564_v34   ;;  %v1727_v6 = vld [vmem:[%s2246_s3 + $0xe0] sm:$0xff]  ;;  %v1735_v8 = vld [vmem:[%s2246_s3 + $0xe8] sm:$0xff]  ;;  %v1745_v10 = vld [vmem:[%s2246_s3 + $0xf0] sm:$0xff] }
  0x17   :  { %v85_v11 = vld [vmem:[%s2245_s1 + $0x98] sm:$0xff]  ;;  %v86_v13 = vld [vmem:[%s2245_s1 + $0xa0] sm:$0xff]  ;;  %v87_v15 = vld [vmem:[%s2245_s1 + $0xa8] sm:$0xff] }
  0x18   :  { %v1753_v12 = vld [vmem:[%s2246_s3 + $0xf8] sm:$0xff]  ;;  %v88_v16 = vld [vmem:[%s2245_s1 + $0xb0] sm:$0xff]  ;;  %v90_v21 = vld [vmem:[%s2245_s1 + $0xc0] sm:$0xff] }
  0x19   :  { %1323 = vmatpush3.bf16.msra.mxu0 %v1320_v25  ;;  %150 = vperm.xlu0 %1417, %v1571_v36   ;;  %v89_v20 = vld [vmem:[%s2245_s1 + $0xb8] sm:$0xff]  ;;  %v91_v22 = vld [vmem:[%s2245_s1 + $0xc8] sm:$0xff]  ;;  %v92_v25 = vld [vmem:[%s2245_s1 + $0xd0] sm:$0xff] }
  0x1a   :  { %1325 = vmatprep.subr.bf16.mxu0 %v1324_v30  ;;  %155 = vperm.xlu1 %1418, %v1576_v37   ;;  %v93_v26 = vld [vmem:[%s2245_s1 + $0xd8] sm:$0xff]  ;;  %v94_v27 = vld [vmem:[%s2245_s1 + $0xe0] sm:$0xff]  ;;  %v96_v31 = vld [vmem:[%s2245_s1 + $0xf0] sm:$0xff] }
  0x1b   :  { %v97_v32 = vld [vmem:[%s2245_s1 + $0xf8] sm:$0xff] }
  0x1d   :  { %1327 = vmatpush3.bf16.msra.mxu0 %v1324_v30  ;;  %160 = vperm.xlu0 %1417, %v1583_v38   ;;  %v95_v30 = vld [vmem:[%s2245_s1 + $0xe8] sm:$0xff] }
  0x1e   :  { %1329 = vmatprep.subr.bf16.mxu0 %v1328_v35  ;;  %165 = vperm.xlu1 %1418, %v1591_v40  }
  0x21   :  { %1331 = vmatpush3.bf16.msra.mxu0 %v1328_v35  ;;  %170 = vperm.xlu0 %1417, %v1601_v42   ;;  %v1428_v35 = vmov 0.0|0.0  }
  0x22   :  { %175 = vperm.xlu1 %1418, %v1609_v44   ;;  %1332 = vmatprep.subr.bf16.mxu0 %v1428_v35 }
  0x23   :  { %1380 = vmatprep.subr.bf16.mxu1 %v1428_v35 }
  0x24   :  { %1253 = vmatmul.mubr.f32.vlgmr.msra.gmra.mrb[0].mxu0 %v67_v39  ;;  %v1429_v39 = vmov 1  }
  0x25   :  { %1255 = vmatprep.mubr.f32.mxu0 %v68_v41  ;;  %180 = vperm.xlu0 %1417, %v1619_v46   ;;  %v1430_v41 = vmov 2  }
  0x26   :  { %185 = vperm.xlu1 %1418, %v1627_v48  }
  0x28   :  { %1256 = vmatmul.mubr.f32.gmra.mrb[2].mxu0 %v69_v43  ;;  %v516_v43 = vld [vmem:[%s2247_s2 + $0x8] sm:$0xff] }
  0x29   :  { %1258 = vmatprep.mubr.f32.mxu0 %v70_v45  ;;  %190 = vperm.xlu0 %1417, %v1637_v50   ;;  %v540_v45 = vld [vmem:[%s2247_s2 + $0xc8] sm:$0xff] }
  0x2a   :  { %195 = vperm.xlu1 %1418, %v1645_v52   ;;  %831 = vmatprep.mubr.f32.mxu1 %v540_v45 }
  0x2c   :  { %1259 = vmatmul.mubr.f32.gmra.mrb[4].mxu0 %v71_v47 }
  0x2d   :  { %1261 = vmatprep.mubr.f32.mxu0 %v72_v49  ;;  %200 = vperm.xlu0 %1417, %v1655_v54  }
  0x2e   :  { %205 = vperm.xlu1 %1418, %v1663_v56  }
  0x30   :  { %1262 = vmatmul.mubr.f32.gmra.mrb[6].mxu0 %v73_v51 }
  0x31   :  { %1264 = vmatprep.mubr.f32.mxu0 %v74_v53  ;;  %210 = vperm.xlu0 %1417, %v1673_v58  }
  0x32   :  { %215 = vperm.xlu1 %1418, %v1681_v60  }
  0x34   :  { %1265 = vmatmul.mubr.f32.gmra.mrb[8].mxu0 %v75_v55 }
  0x35   :  { %1267 = vmatprep.mubr.f32.mxu0 %v76_v57  ;;  %220 = vperm.xlu0 %1417, %v1691_v62  }
  0x36   :  { %225 = vperm.xlu1 %1418, %v1699_v0  }
  0x38   :  { %1268 = vmatmul.mubr.f32.gmra.mrb[10].mxu0 %v77_v59 }
  0x39   :  { %1270 = vmatprep.mubr.f32.mxu0 %v78_v61  ;;  %230 = vperm.xlu0 %1417, %v1709_v2  }
  0x3a   :  { %235 = vperm.xlu1 %1418, %v1717_v4  }
  0x3c   :  { %1271 = vmatmul.mubr.f32.gmra.mrb[12].mxu0 %v79_v63 }
  0x3d   :  { %1273 = vmatprep.mubr.f32.mxu0 %v80_v1  ;;  %240 = vperm.xlu0 %1417, %v1727_v6  }
  0x3e   :  { %245 = vperm.xlu1 %1418, %v1735_v8  }
  0x40   :  { %1274 = vmatmul.mubr.f32.gmra.mrb[14].mxu0 %v81_v3 }
  0x41   :  { %1276 = vmatprep.mubr.f32.mxu0 %v82_v5  ;;  %250 = vperm.xlu0 %1417, %v1745_v10  }
  0x42   :  { %255 = vperm.xlu1 %1418, %v1753_v12  }
  0x44   :  { %1277 = vmatmul.mubr.f32.gmra.mrb[16].mxu0 %v83_v7 }
  0x45   :  { %1279 = vmatprep.mubr.f32.mxu0 %v84_v9  ;;  %1421 = vset.pattern.permute.xlu0 %v1430_v41 }
  0x46   :  { %1419 = vset.pattern.permute.xlu1 %v1429_v39  ;;  %969 = vperm.xlu0 %1421, %v1505_v18  }
  0x47   :  { %584 = vperm.xlu1 %1419, %v1505_v18  }
  0x48   :  { %1280 = vmatmul.mubr.f32.gmra.mrb[18].mxu0 %v85_v11 }
  0x49   :  { %1282 = vmatprep.mubr.f32.mxu0 %v86_v13 }
  0x4a   :  { %981 = vperm.xlu0 %1421, %v1523_v23  }
  0x4b   :  { %588 = vperm.xlu1 %1419, %v1499_v17  }
  0x4c   :  { %1283 = vmatmul.mubr.f32.gmra.mrb[20].mxu0 %v87_v15 }
  0x4d   :  { %1285 = vmatprep.mubr.f32.mxu0 %v88_v16 }
  0x4e   :  { %989 = vperm.xlu0 %1421, %v1541_v28  }
  0x4f   :  { %596 = vperm.xlu1 %1419, %v1523_v23  }
  0x50   :  { %1286 = vmatmul.mubr.f32.gmra.mrb[22].mxu0 %v89_v20 }
  0x51   :  { %1288 = vmatprep.mubr.f32.mxu0 %v90_v21 }
  0x52   :  { %997 = vperm.xlu0 %1421, %v1559_v33  }
  0x53   :  { %604 = vperm.xlu1 %1419, %v1541_v28  }
  0x54   :  { %1289 = vmatmul.mubr.f32.gmra.mrb[24].mxu0 %v91_v22 }
  0x55   :  { %1291 = vmatprep.mubr.f32.mxu0 %v92_v25 }
  0x56   :  { %1005 = vperm.xlu0 %1421, %v1571_v36  }
  0x57   :  { %612 = vperm.xlu1 %1419, %v1559_v33  }
  0x58   :  { %1292 = vmatmul.mubr.f32.gmra.mrb[26].mxu0 %v93_v26 }
  0x59   :  { %1294 = vmatprep.mubr.f32.mxu0 %v94_v27 }
  0x5a   :  { %1013 = vperm.xlu0 %1421, %v1583_v38  }
  0x5b   :  { %620 = vperm.xlu1 %1419, %v1571_v36  }
  0x5c   :  { %1295 = vmatmul.mubr.f32.gmra.mrb[28].mxu0 %v95_v30 }
  0x5d   :  { %1297 = vmatprep.mubr.f32.mxu0 %v96_v31 }
  0x5e   :  { %1021 = vperm.xlu0 %1421, %v1601_v42  }
  0x5f   :  { %628 = vperm.xlu1 %1419, %v1583_v38  }
  0x60   :  { %1298 = vmatmul.mubr.f32.gmra.mrb[30].mxu0 %v97_v32 }
  0x61   :  { %771 = vmatprep.mubr.f32.mxu0 %v516_v43 }
  0x62   :  { %1029 = vperm.xlu0 %1421, %v1619_v46  }
  0x63   :  { %636 = vperm.xlu1 %1419, %v1601_v42  }
  0x66   :  { %1037 = vperm.xlu0 %1421, %v1637_v50  }
  0x67   :  { %644 = vperm.xlu1 %1419, %v1619_v46  }
  0x6a   :  { %1045 = vperm.xlu0 %1421, %v1655_v54  }
  0x6b   :  { %652 = vperm.xlu1 %1419, %v1637_v50  }
  0x6e   :  { %1053 = vperm.xlu0 %1421, %v1673_v58  }
  0x6f   :  { %660 = vperm.xlu1 %1419, %v1655_v54  }
  0x72   :  { %1061 = vperm.xlu0 %1421, %v1691_v62  }
  0x73   :  { %668 = vperm.xlu1 %1419, %v1673_v58  }
  0x76   :  { %1069 = vperm.xlu0 %1421, %v1709_v2  }
  0x77   :  { %676 = vperm.xlu1 %1419, %v1691_v62  }
  0x7a   :  { %1422 = vset.pattern.permute.xlu0 %v1429_v39 }
  0x7b   :  { %684 = vperm.xlu1 %1419, %v1709_v2   ;;  %580 = vperm.xlu0 %1422, %v1487_v14  }
  0x7f   :  { %692 = vperm.xlu1 %1419, %v1727_v6   ;;  %592 = vperm.xlu0 %1422, %v1510_v19  }
  0x83   :  { %1420 = vset.pattern.permute.xlu1 %v1430_v41  ;;  %600 = vperm.xlu0 %1422, %v1528_v24  }
  0x84   :  { %v101_v23 = vpop.permute.xlu0 %100  ;;  %965 = vperm.xlu1 %1420, %v1487_v14  }
  0x85   :  { %v111_v18 = vpop.permute.xlu1 %110 }
  0x87   :  { %608 = vperm.xlu0 %1422, %v1546_v29  }
  0x88   :  { %v106_v33 = vpop.permute.xlu0 %105  ;;  %973 = vperm.xlu1 %1420, %v1499_v17  }
  0x89   :  { %v116_v28 = vpop.permute.xlu1 %115 }
  0x8b   :  { %616 = vperm.xlu0 %1422, %v1564_v34  }
  0x8c   :  { %v121_v38 = vpop.permute.xlu0 %120  ;;  %977 = vperm.xlu1 %1420, %v1510_v19  }
  0x8d   :  { %v126_v36 = vpop.permute.xlu1 %125 }
  0x8f   :  { %624 = vperm.xlu0 %1422, %v1576_v37  }
  0x90   :  { %v131_v46 = vpop.permute.xlu0 %130  ;;  %985 = vperm.xlu1 %1420, %v1528_v24  }
  0x91   :  { %v136_v42 = vpop.permute.xlu1 %135 }
  0x93   :  { %632 = vperm.xlu0 %1422, %v1591_v40  }
  0x94   :  { %v141_v49 = vpop.permute.xlu0 %140  ;;  %993 = vperm.xlu1 %1420, %v1546_v29  }
  0x95   :  { %v146_v47 = vpop.permute.xlu1 %145 }
  0x97   :  { %640 = vperm.xlu0 %1422, %v1609_v44  }
  0x98   :  { %v1844_v14 = vpop.permute.xlu0 %150  ;;  %1001 = vperm.xlu1 %1420, %v1564_v34  }
  0x99   :  { %v1842_v17 = vpop.permute.xlu1 %155 }
  0x9b   :  { %648 = vperm.xlu0 %1422, %v1627_v48  }
  0x9c   :  { %1009 = vperm.xlu1 %1420, %v1576_v37   ;;  %v1852_v62 = vpop.permute.xlu0 %160 }
  0x9d   :  { %v1849_v29 = vpop.permute.xlu1 %165 }
  0x9f   :  { %656 = vperm.xlu0 %1422, %v1645_v52  }
  0xa0   :  { %1017 = vperm.xlu1 %1420, %v1591_v40   ;;  %v1858_v15 = vpop.permute.xlu0 %170 }
  0xa1   :  { %v176_v9 = vpop.permute.xlu1 %175 }
  0xa3   :  { %664 = vperm.xlu0 %1422, %v1663_v56  }
  0xa4   :  { %1025 = vperm.xlu1 %1420, %v1609_v44   ;;  %v181_v45 = vpop.permute.xlu0 %180 }
  0xa5   :  { %v186_v31 = vpop.permute.xlu1 %185 }
  0xa7   :  { %672 = vperm.xlu0 %1422, %v1681_v60  }
  0xa8   :  { %1033 = vperm.xlu1 %1420, %v1627_v48  }
  0xab   :  { %680 = vperm.xlu0 %1422, %v1699_v0  }
  0xac   :  { %1041 = vperm.xlu1 %1420, %v1645_v52  }
  0xaf   :  { %688 = vperm.xlu0 %1422, %v1717_v4  }
  0xb0   :  { %1049 = vperm.xlu1 %1420, %v1663_v56  }
  0xb3   :  { %696 = vperm.xlu0 %1422, %v1735_v8  }
  0xb4   :  { %1057 = vperm.xlu1 %1420, %v1681_v60  }
  0xb7   :  { %700 = vperm.xlu0 %1422, %v1745_v10  }
  0xb8   :  { %1065 = vperm.xlu1 %1420, %v1699_v0  }
  0xbb   :  { %1424 = vset.pattern.permute.xlu0 %v1430_v41 }
  0xbc   :  { %1073 = vperm.xlu1 %1420, %v1717_v4   ;;  %1081 = vperm.xlu0 %1424, %v1735_v8   ;;  %v1431_v8 = vmov 3  }
  0xc0   :  { %1077 = vperm.xlu1 %1420, %v1727_v6   ;;  %1426 = vset.pattern.permute.xlu0 %v1431_v8  ;;  %v537_v8 = vld [vmem:[%s2247_s2 + $0xb0] sm:$0xff] }
  0xc4   :  { %1423 = vset.pattern.permute.xlu1 %v1429_v39 }
  0xc5   :  { %704 = vperm.xlu1 %1423, %v1753_v12  }
  0xc9   :  { %1425 = vset.pattern.permute.xlu1 %v1430_v41  ;;  %v65_v41 = vld [vmem:[%s2246_s3] sm:$0x1] }
  0xca   :  { %1085 = vperm.xlu1 %1425, %v1745_v10   ;;  %1163 = vperm.xlu0 %1426, %v65_v41   ;;  %v561_v41 = vld [vmem:[%s2247_s2 + $0x170] sm:$0xff] }
  0xce   :  { %1089 = vperm.xlu1 %1425, %v1753_v12  }
  0xf7   :  { %v1254_v50 = vpop.f32.mrb[0].mxu0 }
  0xf8   :  { %v330_v51 = vadd.f32 %v1254_v50, %v106_v33  ;;  %v324_v53 = vpop.f32.mrb[1].mxu0 }
  0xf9   :  { %v325_v19 = vadd.f32 %v324_v53, %v101_v23 }
  0xfa   :  { %v484_v54 = vmax.f32 %v330_v51, 0.0 }
  0xfb   :  { %v483_v55 = vmax.f32 %v325_v19, 0.0  ;;  %v1257_v24 = vpop.f32.mrb[2].mxu0 }
  0xfc   :  { %v340_v57 = vadd.f32 %v1257_v24, %v116_v28  ;;  %v334_v58 = vpop.f32.mrb[3].mxu0 }
  0xfd   :  { %v1333_v59 = vpack.c.bf16 %v484_v54, %v483_v55  ;;  %v335_v61 = vadd.f32 %v334_v58, %v111_v18 }
  0xfe   :  { %v486_v63 = vmax.f32 %v340_v57, 0.0 }
  0xff   :  { %v485_v1 = vmax.f32 %v335_v61, 0.0  ;;  %v1260_v2 = vpop.f32.mrb[4].mxu0  ;;  %1334 = vmatpush1.bf16.msra.mxu0 %v1333_v59  ;;  %1396 = vmatpush1.bf16.msra.mxu1 %v1333_v59 }
 0x100   :  { %v350_v34 = vadd.f32 %v1260_v2, %v126_v36  ;;  %v344_v3 = vpop.f32.mrb[5].mxu0  ;;  %1335 = vmatprep.subr.bf16.mxu0 %v1428_v35  ;;  %1381 = vmatprep.subr.bf16.mxu1 %v1428_v35 }
 0x101   :  { %v1336_v5 = vpack.c.bf16 %v486_v63, %v485_v1  ;;  %v345_v7 = vadd.f32 %v344_v3, %v121_v38 }
 0x102   :  { %v488_v37 = vmax.f32 %v350_v34, 0.0 }
 0x103   :  { %v487_v11 = vmax.f32 %v345_v7, 0.0  ;;  %v1263_v13 = vpop.f32.mrb[6].mxu0  ;;  %1337 = vmatpush1.bf16.msra.mxu0 %v1336_v5  ;;  %1397 = vmatpush1.bf16.msra.mxu1 %v1336_v5 }
 0x104   :  { %v360_v16 = vadd.f32 %v1263_v13, %v136_v42  ;;  %v354_v20 = vpop.f32.mrb[7].mxu0  ;;  %1338 = vmatprep.subr.bf16.mxu0 %v1428_v35  ;;  %1382 = vmatprep.subr.bf16.mxu1 %v1428_v35  ;;  %v196_v42 = vpop.permute.xlu1 %195 }
 0x105   :  { %v1339_v21 = vpack.c.bf16 %v488_v37, %v487_v11  ;;  %v355_v22 = vadd.f32 %v354_v20, %v131_v46 }
 0x106   :  { %v490_v40 = vmax.f32 %v360_v16, 0.0 }
 0x107   :  { %v489_v25 = vmax.f32 %v355_v22, 0.0  ;;  %v1266_v26 = vpop.f32.mrb[8].mxu0  ;;  %1340 = vmatpush1.bf16.msra.mxu0 %v1339_v21  ;;  %1398 = vmatpush1.bf16.msra.mxu1 %v1339_v21 }
 0x108   :  { %v370_v27 = vadd.f32 %v1266_v26, %v146_v47  ;;  %v364_v30 = vpop.f32.mrb[9].mxu0  ;;  %1341 = vmatprep.subr.bf16.mxu0 %v1428_v35  ;;  %1383 = vmatprep.subr.bf16.mxu1 %v1428_v35  ;;  %v206_v24 = vpop.permute.xlu1 %205 }
 0x109   :  { %v1342_v32 = vpack.c.bf16 %v490_v40, %v489_v25  ;;  %v365_v43 = vadd.f32 %v364_v30, %v141_v49  ;;  %v191_v49 = vpop.permute.xlu0 %190 }
 0x10a   :  { %v492_v44 = vmax.f32 %v370_v27, 0.0 }
 0x10b   :  { %v491_v18 = vmax.f32 %v365_v43, 0.0  ;;  %v1269_v23 = vpop.f32.mrb[10].mxu0  ;;  %1343 = vmatpush1.bf16.msra.mxu0 %v1342_v32  ;;  %1399 = vmatpush1.bf16.msra.mxu1 %v1342_v32 }
 0x10c   :  { %v380_v28 = vadd.f32 %v1269_v23, %v1842_v17  ;;  %v374_v33 = vpop.f32.mrb[11].mxu0  ;;  %1344 = vmatprep.subr.bf16.mxu0 %v1428_v35  ;;  %1384 = vmatprep.subr.bf16.mxu1 %v1428_v35  ;;  %v216_v60 = vpop.permute.xlu1 %215 }
 0x10d   :  { %v1345_v36 = vpack.c.bf16 %v492_v44, %v491_v18  ;;  %v375_v38 = vadd.f32 %v374_v33, %v1844_v14  ;;  %v201_v56 = vpop.permute.xlu0 %200 }
 0x10e   :  { %v494_v48 = vmax.f32 %v380_v28, 0.0 }
 0x10f   :  { %v493_v46 = vmax.f32 %v375_v38, 0.0  ;;  %v1272_v47 = vpop.f32.mrb[12].mxu0  ;;  %1346 = vmatpush1.bf16.msra.mxu0 %v1345_v36  ;;  %1400 = vmatpush1.bf16.msra.mxu1 %v1345_v36 }
 0x110   :  { %v390_v17 = vadd.f32 %v1272_v47, %v1849_v29  ;;  %v384_v50 = vpop.f32.mrb[13].mxu0  ;;  %1347 = vmatprep.subr.bf16.mxu0 %v1428_v35  ;;  %1385 = vmatprep.subr.bf16.mxu1 %v1428_v35  ;;  %v226_v22 = vpop.permute.xlu1 %225 }
 0x111   :  { %v1348_v51 = vpack.c.bf16 %v494_v48, %v493_v46  ;;  %v385_v14 = vadd.f32 %v384_v50, %v1852_v62  ;;  %v211_v7 = vpop.permute.xlu0 %210 }
 0x112   :  { %v496_v52 = vmax.f32 %v390_v17, 0.0 }
 0x113   :  { %v495_v53 = vmax.f32 %v385_v14, 0.0  ;;  %v1275_v19 = vpop.f32.mrb[14].mxu0  ;;  %1349 = vmatpush1.bf16.msra.mxu0 %v1348_v51  ;;  %1401 = vmatpush1.bf16.msra.mxu1 %v1348_v51 }
 0x114   :  { %v400_v54 = vadd.f32 %v1275_v19, %v176_v9  ;;  %v394_v55 = vpop.f32.mrb[15].mxu0  ;;  %1350 = vmatprep.subr.bf16.mxu0 %v1428_v35  ;;  %1386 = vmatprep.subr.bf16.mxu1 %v1428_v35  ;;  %v236_v44 = vpop.permute.xlu1 %235 }
 0x115   :  { %v1351_v57 = vpack.c.bf16 %v496_v52, %v495_v53  ;;  %v395_v58 = vadd.f32 %v394_v55, %v1858_v15  ;;  %v221_v26 = vpop.permute.xlu0 %220 }
 0x116   :  { %v498_v29 = vmax.f32 %v400_v54, 0.0 }
 0x117   :  { %v497_v59 = vmax.f32 %v395_v58, 0.0  ;;  %v1278_v61 = vpop.f32.mrb[16].mxu0  ;;  %1352 = vmatpush1.bf16.msra.mxu0 %v1351_v57  ;;  %1402 = vmatpush1.bf16.msra.mxu1 %v1351_v57 }
 0x118   :  { %v410_v62 = vadd.f32 %v1278_v61, %v186_v31  ;;  %v404_v63 = vpop.f32.mrb[17].mxu0  ;;  %1353 = vmatprep.subr.bf16.mxu0 %v1428_v35  ;;  %1387 = vmatprep.subr.bf16.mxu1 %v1428_v35  ;;  %v246_v17 = vpop.permute.xlu1 %245 }
 0x119   :  { %v1354_v1 = vpack.c.bf16 %v498_v29, %v497_v59  ;;  %v405_v2 = vadd.f32 %v404_v63, %v181_v45  ;;  %v231_v28 = vpop.permute.xlu0 %230 }
 0x11a   :  { %v500_v34 = vmax.f32 %v410_v62, 0.0 }
 0x11b   :  { %v499_v3 = vmax.f32 %v405_v2, 0.0  ;;  %v1281_v5 = vpop.f32.mrb[18].mxu0  ;;  %1355 = vmatpush1.bf16.msra.mxu0 %v1354_v1  ;;  %1403 = vmatpush1.bf16.msra.mxu1 %v1354_v1 }
 0x11c   :  { %v420_v37 = vadd.f32 %v1281_v5, %v196_v42  ;;  %v414_v9 = vpop.f32.mrb[19].mxu0  ;;  %1356 = vmatprep.subr.bf16.mxu0 %v1428_v35  ;;  %1388 = vmatprep.subr.bf16.mxu1 %v1428_v35  ;;  %v256_v58 = vpop.permute.xlu1 %255  ;;  %v518_v5 = vld [vmem:[%s2247_s2 + $0x18] sm:$0xff] }
 0x11d   :  { %v1357_v11 = vpack.c.bf16 %v500_v34, %v499_v3  ;;  %v415_v13 = vadd.f32 %v414_v9, %v191_v49  ;;  %v241_v14 = vpop.permute.xlu0 %240  ;;  %v539_v3 = vld [vmem:[%s2247_s2 + $0xc0] sm:$0xff]  ;;  %v520_v9 = vld [vmem:[%s2247_s2 + $0x28] sm:$0xff] }
 0x11e   :  { %v502_v0 = vmax.f32 %v420_v37, 0.0  ;;  %v541_v37 = vld [vmem:[%s2247_s2 + $0xd0] sm:$0xff] }
 0x11f   :  { %v501_v15 = vmax.f32 %v415_v13, 0.0  ;;  %v1284_v16 = vpop.f32.mrb[20].mxu0  ;;  %1358 = vmatpush1.bf16.msra.mxu0 %v1357_v11  ;;  %1404 = vmatpush1.bf16.msra.mxu1 %v1357_v11  ;;  %v544_v11 = vld [vmem:[%s2247_s2 + $0xe8] sm:$0xff]  ;;  %v519_v13 = vld [vmem:[%s2247_s2 + $0x20] sm:$0xff] }
 0x120   :  { %v430_v20 = vadd.f32 %v1284_v16, %v206_v24  ;;  %v424_v21 = vpop.f32.mrb[21].mxu0  ;;  %1359 = vmatprep.subr.bf16.mxu0 %v1428_v35  ;;  %1389 = vmatprep.subr.bf16.mxu1 %v1428_v35  ;;  %v546_v16 = vld [vmem:[%s2247_s2 + $0xf8] sm:$0xff] }
 0x121   :  { %v1360_v40 = vpack.c.bf16 %v502_v0, %v501_v15  ;;  %v425_v25 = vadd.f32 %v424_v21, %v201_v56  ;;  %v251_v59 = vpop.permute.xlu0 %250  ;;  %v543_v0 = vld [vmem:[%s2247_s2 + $0xe0] sm:$0xff]  ;;  %v522_v15 = vld [vmem:[%s2247_s2 + $0x38] sm:$0xff]  ;;  %v545_v21 = vld [vmem:[%s2247_s2 + $0xf0] sm:$0xff] }
 0x122   :  { %v504_v4 = vmax.f32 %v430_v20, 0.0  ;;  %v521_v20 = vld [vmem:[%s2247_s2 + $0x30] sm:$0xff] }
 0x123   :  { %v503_v27 = vmax.f32 %v425_v25, 0.0  ;;  %v1287_v30 = vpop.f32.mrb[22].mxu0  ;;  %1361 = vmatpush1.bf16.msra.mxu0 %v1360_v40  ;;  %1405 = vmatpush1.bf16.msra.mxu1 %v1360_v40  ;;  %v548_v40 = vld [vmem:[%s2247_s2 + $0x108] sm:$0xff]  ;;  %v523_v25 = vld [vmem:[%s2247_s2 + $0x40] sm:$0xff] }
 0x124   :  { %v440_v31 = vadd.f32 %v1287_v30, %v216_v60  ;;  %v434_v32 = vpop.f32.mrb[23].mxu0  ;;  %1362 = vmatprep.subr.bf16.mxu0 %v1428_v35  ;;  %1390 = vmatprep.subr.bf16.mxu1 %v1428_v35  ;;  %v515_v60 = vld [vmem:[%s2247_s2] sm:$0xff]  ;;  %v525_v30 = vld [vmem:[%s2247_s2 + $0x50] sm:$0xff] }
 0x125   :  { %v1363_v43 = vpack.c.bf16 %v504_v4, %v503_v27  ;;  %v435_v45 = vadd.f32 %v434_v32, %v211_v7  ;;  %v542_v7 = vld [vmem:[%s2247_s2 + $0xd8] sm:$0xff]  ;;  %v528_v32 = vld [vmem:[%s2247_s2 + $0x68] sm:$0xff] }
 0x126   :  { %v506_v6 = vmax.f32 %v440_v31, 0.0  ;;  %v526_v4 = vld [vmem:[%s2247_s2 + $0x58] sm:$0xff]  ;;  %v549_v31 = vld [vmem:[%s2247_s2 + $0x110] sm:$0xff] }
 0x127   :  { %v505_v18 = vmax.f32 %v435_v45, 0.0  ;;  %v1290_v23 = vpop.f32.mrb[24].mxu0  ;;  %1364 = vmatpush1.bf16.msra.mxu0 %v1363_v43  ;;  %1406 = vmatpush1.bf16.msra.mxu1 %v1363_v43  ;;  %v550_v27 = vld [vmem:[%s2247_s2 + $0x118] sm:$0xff]  ;;  %v552_v43 = vld [vmem:[%s2247_s2 + $0x128] sm:$0xff]  ;;  %v527_v45 = vld [vmem:[%s2247_s2 + $0x60] sm:$0xff] }
 0x128   :  { %v450_v33 = vadd.f32 %v1290_v23, %v226_v22  ;;  %v444_v36 = vpop.f32.mrb[25].mxu0  ;;  %1365 = vmatprep.subr.bf16.mxu0 %v1428_v35  ;;  %1391 = vmatprep.subr.bf16.mxu1 %v1428_v35  ;;  %v524_v22 = vld [vmem:[%s2247_s2 + $0x48] sm:$0xff]  ;;  %v529_v23 = vld [vmem:[%s2247_s2 + $0x70] sm:$0xff] }
 0x129   :  { %v1366_v38 = vpack.c.bf16 %v506_v6, %v505_v18  ;;  %v445_v48 = vadd.f32 %v444_v36, %v221_v26  ;;  %v547_v26 = vld [vmem:[%s2247_s2 + $0x100] sm:$0xff]  ;;  %v554_v18 = vld [vmem:[%s2247_s2 + $0x138] sm:$0xff]  ;;  %v556_v36 = vld [vmem:[%s2247_s2 + $0x148] sm:$0xff] }
 0x12a   :  { %v508_v39 = vmax.f32 %v450_v33, 0.0  ;;  %v551_v6 = vld [vmem:[%s2247_s2 + $0x120] sm:$0xff]  ;;  %v532_v33 = vld [vmem:[%s2247_s2 + $0x88] sm:$0xff] }
 0x12b   :  { %v507_v42 = vmax.f32 %v445_v48, 0.0  ;;  %v1293_v46 = vpop.f32.mrb[26].mxu0  ;;  %1367 = vmatpush1.bf16.msra.mxu0 %v1366_v38  ;;  %1407 = vmatpush1.bf16.msra.mxu1 %v1366_v38  ;;  %v531_v38 = vld [vmem:[%s2247_s2 + $0x80] sm:$0xff] }
 0x12c   :  { %v460_v47 = vadd.f32 %v1293_v46, %v236_v44  ;;  %v454_v49 = vpop.f32.mrb[27].mxu0  ;;  %1368 = vmatprep.subr.bf16.mxu0 %v1428_v35  ;;  %1392 = vmatprep.subr.bf16.mxu1 %v1428_v35  ;;  %v530_v44 = vld [vmem:[%s2247_s2 + $0x78] sm:$0xff]  ;;  %v555_v48 = vld [vmem:[%s2247_s2 + $0x140] sm:$0xff]  ;;  %v533_v46 = vld [vmem:[%s2247_s2 + $0x90] sm:$0xff] }
 0x12d   :  { %v1369_v50 = vpack.c.bf16 %v508_v39, %v507_v42  ;;  %v455_v51 = vadd.f32 %v454_v49, %v231_v28  ;;  %v553_v28 = vld [vmem:[%s2247_s2 + $0x130] sm:$0xff]  ;;  %v534_v39 = vld [vmem:[%s2247_s2 + $0x98] sm:$0xff]  ;;  %v536_v49 = vld [vmem:[%s2247_s2 + $0xa8] sm:$0xff] }
 0x12e   :  { %v510_v52 = vmax.f32 %v460_v47, 0.0  ;;  %v558_v42 = vld [vmem:[%s2247_s2 + $0x158] sm:$0xff]  ;;  %v557_v47 = vld [vmem:[%s2247_s2 + $0x150] sm:$0xff] }
 0x12f   :  { %v509_v53 = vmax.f32 %v455_v51, 0.0  ;;  %v1296_v19 = vpop.f32.mrb[28].mxu0  ;;  %1370 = vmatpush1.bf16.msra.mxu0 %v1369_v50  ;;  %1408 = vmatpush1.bf16.msra.mxu1 %v1369_v50  ;;  %v535_v50 = vld [vmem:[%s2247_s2 + $0xa0] sm:$0xff] }
 0x130   :  { %v470_v54 = vadd.f32 %v1296_v19, %v246_v17  ;;  %v464_v55 = vpop.f32.mrb[29].mxu0  ;;  %1371 = vmatprep.subr.bf16.mxu0 %v1428_v35  ;;  %1393 = vmatprep.subr.bf16.mxu1 %v1428_v35  ;;  %v560_v17 = vld [vmem:[%s2247_s2 + $0x168] sm:$0xff]  ;;  %v559_v51 = vld [vmem:[%s2247_s2 + $0x160] sm:$0xff] }
 0x131   :  { %v1372_v24 = vpack.c.bf16 %v510_v52, %v509_v53  ;;  %v465_v10 = vadd.f32 %v464_v55, %v241_v14  ;;  %v538_v14 = vld [vmem:[%s2247_s2 + $0xb8] sm:$0xff]  ;;  %v564_v53 = vld [vmem:[%s2247_s2 + $0x188] sm:$0xff]  ;;  %v563_v19 = vld [vmem:[%s2247_s2 + $0x180] sm:$0xff] }
 0x132   :  { %v512_v57 = vmax.f32 %v470_v54, 0.0  ;;  %v562_v52 = vld [vmem:[%s2247_s2 + $0x178] sm:$0xff]  ;;  %v565_v55 = vld [vmem:[%s2247_s2 + $0x190] sm:$0xff] }
 0x133   :  { %v511_v56 = vmax.f32 %v465_v10, 0.0  ;;  %v1299_v29 = vpop.f32.mrb[30].mxu0  ;;  %1373 = vmatpush1.bf16.msra.mxu0 %v1372_v24  ;;  %1409 = vmatpush1.bf16.msra.mxu1 %v1372_v24  ;;  %v566_v54 = vld [vmem:[%s2247_s2 + $0x198] sm:$0xff]  ;;  %v568_v24 = vld [vmem:[%s2247_s2 + $0x1a8] sm:$0xff]  ;;  %v567_v10 = vld [vmem:[%s2247_s2 + $0x1a0] sm:$0xff] }
 0x134   :  { %v480_v61 = vadd.f32 %v1299_v29, %v256_v58  ;;  %v474_v62 = vpop.f32.mrb[31].mxu0  ;;  %1374 = vmatprep.subr.bf16.mxu0 %v1428_v35  ;;  %1394 = vmatprep.subr.bf16.mxu1 %v1428_v35  ;;  %v569_v58 = vld [vmem:[%s2247_s2 + $0x1b0] sm:$0xff]  ;;  %v571_v29 = vld [vmem:[%s2247_s2 + $0x1c0] sm:$0xff] }
 0x135   :  { %v1375_v63 = vpack.c.bf16 %v512_v57, %v511_v56  ;;  %v475_v1 = vadd.f32 %v474_v62, %v251_v59  ;;  %v570_v57 = vld [vmem:[%s2247_s2 + $0x1b8] sm:$0xff]  ;;  %v572_v56 = vld [vmem:[%s2247_s2 + $0x1c8] sm:$0xff] }
 0x136   :  { %v514_v2 = vmax.f32 %v480_v61, 0.0  ;;  %v574_v59 = vld [vmem:[%s2247_s2 + $0x1d8] sm:$0xff]  ;;  %v573_v61 = vld [vmem:[%s2247_s2 + $0x1d0] sm:$0xff]  ;;  %v576_v62 = vld [vmem:[%s2247_s2 + $0x1e8] sm:$0xff] }
 0x137   :  { %v513_v34 = vmax.f32 %v475_v1, 0.0  ;;  %1376 = vmatpush1.bf16.msra.mxu0 %v1375_v63  ;;  %1410 = vmatpush1.bf16.msra.mxu1 %v1375_v63  ;;  %v575_v63 = vld [vmem:[%s2247_s2 + $0x1e0] sm:$0xff]  ;;  %v578_v1 = vld [vmem:[%s2247_s2 + $0x1f8] sm:$0xff] }
 0x138   :  { %1377 = vmatprep.subr.bf16.mxu0 %v1428_v35  ;;  %1395 = vmatprep.subr.bf16.mxu1 %v1428_v35  ;;  %v517_v35 = vld [vmem:[%s2247_s2 + $0x10] sm:$0xff] }
 0x139   :  { %v1378_v12 = vpack.c.bf16 %v514_v2, %v513_v34  ;;  %v577_v2 = vld [vmem:[%s2247_s2 + $0x1f0] sm:$0xff]  ;;  %v585_v34 = vpop.permute.xlu1 %584 }
 0x13b   :  { %1379 = vmatpush1.bf16.msra.mxu0 %v1378_v12  ;;  %1411 = vmatpush1.bf16.msra.mxu1 %v1378_v12 }
 0x13d   :  { %v589_v12 = vpop.permute.xlu1 %588 }
 0x13e   :  { %772 = vmatmul.mubr.f32.vlgmr.msra.gmra.mrb[32].mxu0 %v515_v60  ;;  %832 = vmatmul.mubr.f32.vlgmr.msra.gmra.mrb[0].mxu1 %v539_v3 }
 0x13f   :  { %776 = vmatprep.mubr.f32.mxu0 %v518_v5  ;;  %836 = vmatprep.mubr.f32.mxu1 %v542_v7  ;;  %v970_v5 = vpop.permute.xlu0 %969 }
 0x141   :  { %v2106_v60 = vpop.permute.xlu1 %596 }
 0x142   :  { %777 = vmatmul.mubr.f32.gmra.mrb[34].mxu0 %v517_v35  ;;  %837 = vmatmul.mubr.f32.gmra.mrb[2].mxu1 %v541_v37 }
 0x143   :  { %781 = vmatprep.mubr.f32.mxu0 %v520_v9  ;;  %841 = vmatprep.mubr.f32.mxu1 %v544_v11  ;;  %v2112_v35 = vpop.permute.xlu0 %981 }
 0x145   :  { %v2108_v3 = vpop.permute.xlu1 %604 }
 0x146   :  { %782 = vmatmul.mubr.f32.gmra.mrb[36].mxu0 %v519_v13  ;;  %842 = vmatmul.mubr.f32.gmra.mrb[4].mxu1 %v543_v0 }
 0x147   :  { %786 = vmatprep.mubr.f32.mxu0 %v522_v15  ;;  %846 = vmatprep.mubr.f32.mxu1 %v546_v16  ;;  %v2116_v9 = vpop.permute.xlu0 %989 }
 0x149   :  { %v2110_v7 = vpop.permute.xlu1 %612 }
 0x14a   :  { %787 = vmatmul.mubr.f32.gmra.mrb[38].mxu0 %v521_v20  ;;  %847 = vmatmul.mubr.f32.gmra.mrb[6].mxu1 %v545_v21 }
 0x14b   :  { %791 = vmatprep.mubr.f32.mxu0 %v524_v22  ;;  %851 = vmatprep.mubr.f32.mxu1 %v548_v40  ;;  %v2118_v13 = vpop.permute.xlu0 %997 }
 0x14d   :  { %v2114_v37 = vpop.permute.xlu1 %620 }
 0x14e   :  { %792 = vmatmul.mubr.f32.gmra.mrb[40].mxu0 %v523_v25  ;;  %852 = vmatmul.mubr.f32.gmra.mrb[8].mxu1 %v547_v26 }
 0x14f   :  { %796 = vmatprep.mubr.f32.mxu0 %v526_v4  ;;  %856 = vmatprep.mubr.f32.mxu1 %v550_v27  ;;  %v2120_v15 = vpop.permute.xlu0 %1005 }
 0x151   :  { %v629_v11 = vpop.permute.xlu1 %628 }
 0x152   :  { %797 = vmatmul.mubr.f32.gmra.mrb[42].mxu0 %v525_v30  ;;  %857 = vmatmul.mubr.f32.gmra.mrb[10].mxu1 %v549_v31 }
 0x153   :  { %801 = vmatprep.mubr.f32.mxu0 %v528_v32  ;;  %861 = vmatprep.mubr.f32.mxu1 %v552_v43  ;;  %v2124_v20 = vpop.permute.xlu0 %1013 }
 0x155   :  { %v637_v0 = vpop.permute.xlu1 %636 }
 0x156   :  { %802 = vmatmul.mubr.f32.gmra.mrb[44].mxu0 %v527_v45  ;;  %862 = vmatmul.mubr.f32.gmra.mrb[12].mxu1 %v551_v6 }
 0x157   :  { %806 = vmatprep.mubr.f32.mxu0 %v530_v44  ;;  %866 = vmatprep.mubr.f32.mxu1 %v554_v18  ;;  %v2128_v22 = vpop.permute.xlu0 %1021 }
 0x159   :  { %v2122_v16 = vpop.permute.xlu1 %644 }
 0x15a   :  { %807 = vmatmul.mubr.f32.gmra.mrb[46].mxu0 %v529_v23  ;;  %867 = vmatmul.mubr.f32.gmra.mrb[14].mxu1 %v553_v28 }
 0x15b   :  { %811 = vmatprep.mubr.f32.mxu0 %v532_v33  ;;  %871 = vmatprep.mubr.f32.mxu1 %v556_v36  ;;  %v2132_v25 = vpop.permute.xlu0 %1029 }
 0x15d   :  { %v2126_v21 = vpop.permute.xlu1 %652 }
 0x15e   :  { %812 = vmatmul.mubr.f32.gmra.mrb[48].mxu0 %v531_v38  ;;  %872 = vmatmul.mubr.f32.gmra.mrb[16].mxu1 %v555_v48 }
 0x15f   :  { %816 = vmatprep.mubr.f32.mxu0 %v534_v39  ;;  %876 = vmatprep.mubr.f32.mxu1 %v558_v42  ;;  %v2136_v4 = vpop.permute.xlu0 %1037 }
 0x161   :  { %v2130_v40 = vpop.permute.xlu1 %660 }
 0x162   :  { %817 = vmatmul.mubr.f32.gmra.mrb[50].mxu0 %v533_v46  ;;  %877 = vmatmul.mubr.f32.gmra.mrb[18].mxu1 %v557_v47 }
 0x163   :  { %821 = vmatprep.mubr.f32.mxu0 %v536_v49  ;;  %881 = vmatprep.mubr.f32.mxu1 %v560_v17  ;;  %v2140_v30 = vpop.permute.xlu0 %1045 }
 0x165   :  { %v2134_v26 = vpop.permute.xlu1 %668 }
 0x166   :  { %822 = vmatmul.mubr.f32.gmra.mrb[52].mxu0 %v535_v50  ;;  %882 = vmatmul.mubr.f32.gmra.mrb[20].mxu1 %v559_v51 }
 0x167   :  { %826 = vmatprep.mubr.f32.mxu0 %v538_v14  ;;  %886 = vmatprep.mubr.f32.mxu1 %v562_v52  ;;  %v2144_v32 = vpop.permute.xlu0 %1053 }
 0x169   :  { %v2138_v27 = vpop.permute.xlu1 %676 }
 0x16a   :  { %827 = vmatmul.mubr.f32.gmra.mrb[54].mxu0 %v537_v8  ;;  %887 = vmatmul.mubr.f32.gmra.mrb[22].mxu1 %v561_v41 }
 0x16b   :  { %891 = vmatprep.mubr.f32.mxu1 %v564_v53  ;;  %v2148_v45 = vpop.permute.xlu0 %1061 }
 0x16d   :  { %v2142_v31 = vpop.permute.xlu1 %684 }
 0x16e   :  { %892 = vmatmul.mubr.f32.gmra.mrb[24].mxu1 %v563_v19 }
 0x16f   :  { %896 = vmatprep.mubr.f32.mxu1 %v566_v54  ;;  %v2150_v44 = vpop.permute.xlu0 %1069 }
 0x171   :  { %v2146_v43 = vpop.permute.xlu1 %692 }
 0x172   :  { %897 = vmatmul.mubr.f32.gmra.mrb[26].mxu1 %v565_v55 }
 0x173   :  { %901 = vmatprep.mubr.f32.mxu1 %v568_v24  ;;  %v581_v23 = vpop.permute.xlu0 %580 }
 0x175   :  { %v966_v6 = vpop.permute.xlu1 %965 }
 0x176   :  { %902 = vmatmul.mubr.f32.gmra.mrb[28].mxu1 %v567_v10 }
 0x177   :  { %906 = vmatprep.mubr.f32.mxu1 %v570_v57  ;;  %v593_v33 = vpop.permute.xlu0 %592 }
 0x179   :  { %v974_v18 = vpop.permute.xlu1 %973 }
 0x17a   :  { %907 = vmatmul.mubr.f32.gmra.mrb[30].mxu1 %v569_v58 }
 0x17b   :  { %911 = vmatprep.mubr.f32.mxu1 %v572_v56  ;;  %v601_v38 = vpop.permute.xlu0 %600 }
 0x17d   :  { %v978_v28 = vpop.permute.xlu1 %977 }
 0x17e   :  { %912 = vmatmul.mubr.f32.gmra.mrb[32].mxu1 %v571_v29 }
 0x17f   :  { %916 = vmatprep.mubr.f32.mxu1 %v574_v59  ;;  %v2154_v39 = vpop.permute.xlu0 %608 }
 0x181   :  { %v986_v36 = vpop.permute.xlu1 %985 }
 0x182   :  { %917 = vmatmul.mubr.f32.gmra.mrb[34].mxu1 %v573_v61 }
 0x183   :  { %921 = vmatprep.mubr.f32.mxu1 %v576_v62  ;;  %v2160_v14 = vpop.permute.xlu0 %616 }
 0x185   :  { %v2152_v48 = vpop.permute.xlu1 %993 }
 0x186   :  { %922 = vmatmul.mubr.f32.gmra.mrb[36].mxu1 %v575_v63 }
 0x187   :  { %926 = vmatprep.mubr.f32.mxu1 %v578_v1  ;;  %v2168_v63 = vpop.permute.xlu0 %624 }
 0x189   :  { %v2156_v42 = vpop.permute.xlu1 %1001 }
 0x18a   :  { %927 = vmatmul.mubr.f32.gmra.mrb[38].mxu1 %v577_v2 }
 0x18d   :  { %v2164_v55 = vpop.permute.xlu1 %1009 }
 0x211   :  { %v773_v46 = vpop.f32.mrb[32].mxu0  ;;  %v833_v47 = vpop.f32.mrb[0].mxu1 }
 0x212   :  { %v774_v49 = vadd.f32 %v773_v46, %v581_v23  ;;  %v2158_v17 = vadd.f32 %v833_v47, %v629_v11  ;;  %v775_v50 = vpop.f32.mrb[33].mxu0  ;;  %v835_v51 = vpop.f32.mrb[1].mxu1 }
 0x213   :  { %v2172_v50 = vpop.permute.xlu1 %1017 }
 0x214   :  { %v932_v41 = vmax.f32 %v774_v49, 0.0 }
 0x215   :  { %v778_v52 = vpop.f32.mrb[34].mxu0  ;;  %v2162_v8 = vpop.f32.mrb[2].mxu1 }
 0x216   :  { %v779_v53 = vadd.f32 %v778_v52, %v585_v34  ;;  %v780_v19 = vpop.f32.mrb[35].mxu0  ;;  %v840_v54 = vpop.f32.mrb[3].mxu1  ;;  %v1092_v58 = vmul.f32 %v966_v6, %v932_v41 }
 0x217   :  { %v633_v54 = vpop.permute.xlu0 %632 }
 0x218   :  { %v933_v24 = vmax.f32 %v779_v53, 0.0 }
 0x219   :  { %v783_v10 = vpop.f32.mrb[36].mxu0  ;;  %v843_v57 = vpop.f32.mrb[4].mxu1 }
 0x21a   :  { %v1093_v56 = vmul.f32 %v970_v5, %v933_v24  ;;  %v784_v29 = vadd.f32 %v783_v10, %v589_v12  ;;  %v2166_v59 = vadd.f32 %v843_v57, %v637_v0  ;;  %v785_v61 = vpop.f32.mrb[37].mxu0  ;;  %v845_v62 = vpop.f32.mrb[5].mxu1 }
 0x21b   :  { %v2181_v61 = vpop.permute.xlu1 %1025 }
 0x21c   :  { %v1124_v1 = vadd.f32 %v1093_v56, %v1092_v58  ;;  %v934_v2 = vmax.f32 %v784_v29, 0.0 }
 0x21d   :  { %v788_v11 = vpop.f32.mrb[38].mxu0  ;;  %v2170_v34 = vpop.f32.mrb[6].mxu1 }
 0x21e   :  { %v1094_v23 = vmul.f32 %v974_v18, %v934_v2  ;;  %v789_v46 = vadd.f32 %v788_v11, %v593_v33  ;;  %v790_v47 = vpop.f32.mrb[39].mxu0  ;;  %v850_v49 = vpop.f32.mrb[7].mxu1 }
 0x21f   :  { %v641_v47 = vpop.permute.xlu0 %640 }
 0x220   :  { %v1125_v6 = vadd.f32 %v1124_v1, %v1094_v23  ;;  %v935_v5 = vmax.f32 %v789_v46, 0.0 }
 0x221   :  { %v793_v12 = vpop.f32.mrb[40].mxu0  ;;  %v853_v0 = vpop.f32.mrb[8].mxu1 }
 0x222   :  { %v1095_v51 = vmul.f32 %v978_v28, %v935_v5  ;;  %v794_v52 = vadd.f32 %v793_v12, %v2106_v60  ;;  %v2176_v41 = vadd.f32 %v853_v0, %v2122_v16  ;;  %v795_v53 = vpop.f32.mrb[41].mxu0  ;;  %v855_v19 = vpop.f32.mrb[9].mxu1 }
 0x224   :  { %v1126_v24 = vadd.f32 %v1125_v6, %v1095_v51  ;;  %v936_v18 = vmax.f32 %v794_v52, 0.0 }
 0x225   :  { %v798_v33 = vpop.f32.mrb[42].mxu0  ;;  %v2178_v10 = vpop.f32.mrb[10].mxu1 }
 0x226   :  { %v1096_v57 = vmul.f32 %v2112_v35, %v936_v18  ;;  %v799_v58 = vadd.f32 %v798_v33, %v601_v38  ;;  %v800_v56 = vpop.f32.mrb[43].mxu0  ;;  %v860_v29 = vpop.f32.mrb[11].mxu1 }
 0x228   :  { %v1127_v28 = vadd.f32 %v1126_v24, %v1096_v57  ;;  %v937_v60 = vmax.f32 %v799_v58, 0.0 }
 0x229   :  { %v803_v62 = vpop.f32.mrb[44].mxu0  ;;  %v863_v16 = vpop.f32.mrb[12].mxu1 }
 0x22a   :  { %v1097_v1 = vmul.f32 %v986_v36, %v937_v60  ;;  %v804_v2 = vadd.f32 %v803_v62, %v2108_v3  ;;  %v2185_v11 = vadd.f32 %v863_v16, %v2126_v21  ;;  %v805_v23 = vpop.f32.mrb[45].mxu0  ;;  %v865_v46 = vpop.f32.mrb[13].mxu1 }
 0x22b   :  { %v2191_v36 = vpop.permute.xlu1 %1033 }
 0x22c   :  { %v1128_v49 = vadd.f32 %v1127_v28, %v1097_v1  ;;  %v938_v35 = vmax.f32 %v804_v2, 0.0 }
 0x22d   :  { %v808_v38 = vpop.f32.mrb[46].mxu0  ;;  %v2187_v6 = vpop.f32.mrb[14].mxu1 }
 0x22e   :  { %v1098_v5 = vmul.f32 %v2116_v9, %v938_v35  ;;  %v809_v12 = vadd.f32 %v808_v38, %v2154_v39  ;;  %v810_v0 = vpop.f32.mrb[47].mxu0  ;;  %v870_v51 = vpop.f32.mrb[15].mxu1 }
 0x22f   :  { %v649_v9 = vpop.permute.xlu0 %648  ;;  %v839_v51 = vadd.f32 %v2162_v8, %v633_v54  ;;  %v946_v54 = vmax.f32 %v2166_v59, 0.0 }
 0x230   :  { %v1129_v3 = vadd.f32 %v1128_v49, %v1098_v5  ;;  %v939_v52 = vmax.f32 %v809_v12, 0.0 }
 0x231   :  { %v813_v21 = vpop.f32.mrb[48].mxu0  ;;  %v873_v53 = vpop.f32.mrb[16].mxu1 }
 0x232   :  { %v1099_v19 = vmul.f32 %v2152_v48, %v939_v52  ;;  %v814_v24 = vadd.f32 %v813_v21, %v2110_v7  ;;  %v2196_v18 = vadd.f32 %v873_v53, %v2130_v40  ;;  %v815_v33 = vpop.f32.mrb[49].mxu0  ;;  %v875_v57 = vpop.f32.mrb[17].mxu1 }
 0x233   :  { %v2202_v48 = vpop.permute.xlu1 %1041  ;;  %v945_v57 = vmax.f32 %v839_v51, 0.0 }
 0x234   :  { %v1130_v58 = vadd.f32 %v1129_v3, %v1099_v19  ;;  %v940_v39 = vmax.f32 %v814_v24, 0.0 }
 0x235   :  { %v818_v56 = vpop.f32.mrb[50].mxu0  ;;  %v2198_v29 = vpop.f32.mrb[18].mxu1 }
 0x236   :  { %v1100_v28 = vmul.f32 %v2118_v13, %v940_v39  ;;  %v819_v60 = vadd.f32 %v818_v56, %v2160_v14  ;;  %v820_v62 = vpop.f32.mrb[51].mxu0  ;;  %v880_v16 = vpop.f32.mrb[19].mxu1 }
 0x237   :  { %v657_v13 = vpop.permute.xlu0 %656  ;;  %v1050_v53 = vpop.permute.xlu1 %1049  ;;  %v859_v16 = vadd.f32 %v2178_v10, %v649_v9  ;;  %v950_v9 = vmax.f32 %v2185_v11, 0.0 }
 0x238   :  { %v1131_v7 = vadd.f32 %v1130_v58, %v1100_v28  ;;  %v941_v1 = vmax.f32 %v819_v60, 0.0  ;;  %v849_v58 = vadd.f32 %v2170_v34, %v641_v47  ;;  %v1105_v60 = vmul.f32 %v2172_v50, %v945_v57 }
 0x239   :  { %v823_v40 = vpop.f32.mrb[52].mxu0  ;;  %v883_v2 = vpop.f32.mrb[20].mxu1 }
 0x23a   :  { %v1101_v23 = vmul.f32 %v2156_v42, %v941_v1  ;;  %v824_v46 = vadd.f32 %v823_v40, %v2114_v37  ;;  %v2207_v49 = vadd.f32 %v883_v2, %v2134_v26  ;;  %v825_v35 = vpop.f32.mrb[53].mxu0  ;;  %v885_v38 = vpop.f32.mrb[21].mxu1  ;;  %v944_v37 = vmax.f32 %v2158_v17, 0.0 }
 0x23b   :  { %v665_v24 = vpop.permute.xlu0 %664  ;;  %v1058_v17 = vpop.permute.xlu1 %1057  ;;  %v947_v62 = vmax.f32 %v849_v58, 0.0  ;;  %v949_v2 = vmax.f32 %v859_v16, 0.0 }
 0x23c   :  { %v1132_v5 = vadd.f32 %v1131_v7, %v1101_v23  ;;  %v942_v14 = vmax.f32 %v824_v46, 0.0 }
 0x23d   :  { %v828_v12 = vpop.f32.mrb[54].mxu0  ;;  %v888_v0 = vpop.f32.mrb[22].mxu1  ;;  %v1107_v59 = vmul.f32 %v2181_v61, %v947_v62 }
 0x23e   :  { %v1102_v3 = vmul.f32 %v2120_v15, %v942_v14  ;;  %v829_v52 = vadd.f32 %v828_v12, %v2168_v63  ;;  %v830_v21 = vpop.f32.mrb[55].mxu0  ;;  %v890_v42 = vpop.f32.mrb[23].mxu1  ;;  %v1104_v63 = vmul.f32 %v2124_v20, %v944_v37  ;;  %v869_v20 = vadd.f32 %v2187_v6, %v657_v13 }
 0x23f   :  { %v673_v47 = vpop.permute.xlu0 %672  ;;  %v1066_v35 = vpop.permute.xlu1 %1065  ;;  %v1109_v14 = vmul.f32 %v2191_v36, %v949_v2  ;;  %v879_v6 = vadd.f32 %v2198_v29, %v665_v24  ;;  %v1110_v12 = vmul.f32 %v2136_v4, %v950_v9 }
 0x240   :  { %v1133_v26 = vadd.f32 %v1132_v5, %v1102_v3  ;;  %v943_v19 = vmax.f32 %v829_v52, 0.0  ;;  %v951_v5 = vmax.f32 %v869_v20, 0.0  ;;  %v889_v21 = vadd.f32 %v888_v0, %v673_v47 }
 0x241   :  { %v893_v33 = vpop.f32.mrb[24].mxu1  ;;  %v953_v11 = vmax.f32 %v879_v6, 0.0 }
 0x242   :  { %v1103_v39 = vmul.f32 %v2164_v55, %v943_v19  ;;  %v2216_v8 = vadd.f32 %v893_v33, %v2138_v27  ;;  %v895_v15 = vpop.f32.mrb[25].mxu1  ;;  %v1106_v55 = vmul.f32 %v2128_v22, %v946_v54  ;;  %v948_v27 = vmax.f32 %v2176_v41, 0.0 }
 0x243   :  { %v681_v22 = vpop.permute.xlu0 %680  ;;  %v1111_v3 = vmul.f32 %v2202_v48, %v951_v5  ;;  %v1074_v52 = vpop.permute.xlu1 %1073  ;;  %v954_v19 = vmax.f32 %v2207_v49, 0.0  ;;  %v1113_v33 = vmul.f32 %v1050_v53, %v953_v11 }
 0x244   :  { %v1134_v56 = vadd.f32 %v1133_v26, %v1103_v39  ;;  %v1108_v10 = vmul.f32 %v2132_v25, %v948_v27 }
 0x245   :  { %v898_v28 = vpop.f32.mrb[26].mxu1  ;;  %v1114_v15 = vmul.f32 %v2144_v32, %v954_v19 }
 0x246   :  { %v1135_v7 = vadd.f32 %v1134_v56, %v1104_v63  ;;  %v900_v34 = vpop.f32.mrb[27].mxu1  ;;  %v899_v58 = vadd.f32 %v898_v28, %v681_v22  ;;  %v956_v63 = vmax.f32 %v2216_v8, 0.0 }
 0x247   :  { %v689_v36 = vpop.permute.xlu0 %688  ;;  %v1078_v39 = vpop.permute.xlu1 %1077 }
 0x248   :  { %v1136_v1 = vadd.f32 %v1135_v7, %v1105_v60  ;;  %v1116_v53 = vmul.f32 %v2148_v45, %v956_v63 }
 0x249   :  { %v903_v40 = vpop.f32.mrb[28].mxu1 }
 0x24a   :  { %v1137_v23 = vadd.f32 %v1136_v1, %v1106_v55  ;;  %v904_v50 = vadd.f32 %v903_v40, %v2142_v31  ;;  %v905_v46 = vpop.f32.mrb[29].mxu1  ;;  %v952_v31 = vmax.f32 %v2196_v18, 0.0  ;;  %v955_v18 = vmax.f32 %v889_v21, 0.0 }
 0x24b   :  { %v705_v34 = vpop.permute.xlu1 %704 }
 0x24c   :  { %v1138_v38 = vadd.f32 %v1137_v23, %v1107_v59  ;;  %v1112_v29 = vmul.f32 %v2140_v30, %v952_v31  ;;  %v1115_v56 = vmul.f32 %v1058_v17, %v955_v18  ;;  %v957_v30 = vmax.f32 %v899_v58, 0.0 }
 0x24d   :  { %v908_v41 = vpop.f32.mrb[30].mxu1  ;;  %v958_v7 = vmax.f32 %v904_v50, 0.0 }
 0x24e   :  { %v1139_v13 = vadd.f32 %v1138_v38, %v1108_v10  ;;  %v910_v61 = vpop.f32.mrb[31].mxu1  ;;  %v909_v62 = vadd.f32 %v908_v41, %v689_v36  ;;  %v1117_v55 = vmul.f32 %v1066_v35, %v957_v30 }
 0x24f   :  { %v1118_v40 = vmul.f32 %v2150_v44, %v958_v7  ;;  %v1086_v45 = vpop.permute.xlu1 %1085 }
 0x250   :  { %v1140_v51 = vadd.f32 %v1139_v13, %v1109_v14  ;;  %v959_v27 = vmax.f32 %v909_v62, 0.0 }
 0x251   :  { %v913_v25 = vpop.f32.mrb[32].mxu1 }
 0x252   :  { %v1141_v42 = vadd.f32 %v1140_v51, %v1110_v12  ;;  %v914_v37 = vadd.f32 %v913_v25, %v2146_v43  ;;  %v915_v26 = vpop.f32.mrb[33].mxu1  ;;  %v697_v43 = vpop.permute.xlu0 %696  ;;  %v1119_v23 = vmul.f32 %v1074_v52, %v959_v27 }
 0x253   :  { %v1090_v14 = vpop.permute.xlu1 %1089 }
 0x254   :  { %v1142_v24 = vadd.f32 %v1141_v42, %v1111_v3  ;;  %v960_v17 = vmax.f32 %v914_v37, 0.0 }
 0x255   :  { %v918_v4 = vpop.f32.mrb[34].mxu1 }
 0x256   :  { %v1143_v57 = vadd.f32 %v1142_v24, %v1112_v29  ;;  %v920_v48 = vpop.f32.mrb[35].mxu1  ;;  %v919_v32 = vadd.f32 %v918_v4, %v697_v43  ;;  %v701_v20 = vpop.permute.xlu0 %700  ;;  %v1120_v38 = vmul.f32 %v1078_v39, %v960_v17 }
 0x258   :  { %v1144_v0 = vadd.f32 %v1143_v57, %v1113_v33  ;;  %v961_v46 = vmax.f32 %v919_v32, 0.0 }
 0x259   :  { %v923_v54 = vpop.f32.mrb[36].mxu1 }
 0x25a   :  { %v1145_v60 = vadd.f32 %v1144_v0, %v1114_v15  ;;  %v925_v49 = vpop.f32.mrb[37].mxu1  ;;  %v924_v59 = vadd.f32 %v923_v54, %v701_v20  ;;  %v1082_v9 = vpop.permute.xlu0 %1081 }
 0x25b   :  { %v1121_v5 = vmul.f32 %v1082_v9, %v961_v46 }
 0x25c   :  { %v1146_v16 = vadd.f32 %v1145_v60, %v1115_v56  ;;  %v962_v22 = vmax.f32 %v924_v59, 0.0 }
 0x25d   :  { %v928_v28 = vpop.f32.mrb[38].mxu1 }
 0x25e   :  { %v1147_v47 = vadd.f32 %v1146_v16, %v1116_v53  ;;  %v930_v1 = vpop.f32.mrb[39].mxu1  ;;  %v929_v10 = vadd.f32 %v928_v28, %v705_v34  ;;  %v1122_v13 = vmul.f32 %v1086_v45, %v962_v22  ;;  %v1164_v11 = vpop.permute.xlu0 %1163 }
 0x260   :  { %v1148_v8 = vadd.f32 %v1147_v47, %v1117_v55  ;;  %v963_v41 = vmax.f32 %v929_v10, 0.0 }
 0x262   :  { %v1149_v2 = vadd.f32 %v1148_v8, %v1118_v40  ;;  %v1123_v12 = vmul.f32 %v1090_v14, %v963_v41 }
 0x264   :  { %v1150_v50 = vadd.f32 %v1149_v2, %v1119_v23 }
 0x266   :  { %v1151_v35 = vadd.f32 %v1150_v50, %v1120_v38 }
 0x268   :  { %v1152_v6 = vadd.f32 %v1151_v35, %v1121_v5 }
 0x26a   :  { %v1153_v61 = vadd.f32 %v1152_v6, %v1122_v13 }
 0x26c   :  { %v1154_v44 = vadd.f32 %v1153_v61, %v1123_v12 }
 0x26e   :  { %v1155_v31 = vrot.slane %v1154_v44, 4 }
 0x270   :  { %v1156_v51 = vadd.f32 %v1155_v31, %v1154_v44 }
 0x272   :  { %v1157_v3 = vrot.slane %v1156_v51, 2 }
 0x274   :  { %v1158_v25 = vadd.f32 %v1157_v3, %v1156_v51 }
 0x276   :  { %v1159_v52 = vrot.slane %v1158_v25, 1 }
 0x278   :  { %v1160_v21 = vadd.f32 %v1159_v52, %v1158_v25 }
 0x27a   :  { %v1166_v42 = vadd.f32 %v1164_v11, %v1160_v21 }
 0x27c   :  { %1167 = vst [vmem:[%s2248_s4] sm:$0x1] %v1166_v42 }

</bundles_post_ra>
